<compile_context>
chip_gen: v6e
topology: v6e:2x2x1
jax: 0.10.0
libtpu: 0.0.40
codegen_flags: <defaults>
</compile_context>

<pallas_src>
import jax
import jax.numpy as jnp
from jax.experimental import pallas as pl
from jax.experimental.pallas import tpu as pltpu

# ----------------------------- config (synthetic) -----------------------------
VOCAB_SIZE = 64          # synthetic vocab for the stand-in embedding
HIDDEN_SIZE = 32         # config.HIDDEN_SIZE
NUM_CLASSES = 4          # config.NUM_CLASSES  -> linear out = NUM_CLASSES + 1 = 5
NUM_LABELS = NUM_CLASSES + 1
BATCH = 2
SEQ = 8
M = BATCH * SEQ          # flattened rows (B*S)
C_PAD = 128              # lane-dense padded class dim (one unmasked 128-lane store)

# stacked embedding table layout: [word (VOCAB) | type (2) | position (SEQ) | zero pad]
TYPE_OFF = VOCAB_SIZE
POS_OFF = VOCAB_SIZE + 2
T_ROWS = VOCAB_SIZE + 2 + SEQ
T_PAD = ((T_ROWS + 7) // 8) * 8          # pad rows to a multiple of 8 sublanes

LN_EPS = 1e-12


# ------------------------------- Pallas kernel --------------------------------
def fused_kernel(packed_ref, table_ref, w_ref, b_ref, o_ref):
    """Embedding selector-matmul + layernorm + linear1 + softmax, one grid step.

    packed_ref: (M, 2)       int32  [:,0]=input_ids  [:,1]=token_type_ids
    table_ref:  (T_PAD, H)   f32    stacked [word | type | position | pad] table
    w_ref:      (H, C_PAD)   f32    classifier weight, pre-transposed, zero-padded,
                                    LayerNorm gamma folded in
    b_ref:      (1, C_PAD)   f32    classifier bias, padded lanes pre-set to -1e30,
                                    LayerNorm beta folded in
    o_ref:      (M, C_PAD)   f32    softmax probabilities (padded lanes ~ 0)
    """
    packed = packed_ref[...]                                   # (M, 2) int32
    ids = packed[:, 0:1]                                       # (M, 1)
    tt = packed[:, 1:2]                                        # (M, 1)

    # -- build one (M, T_PAD) selector: word + type + position in ONE matmul ---
    col = jax.lax.broadcasted_iota(jnp.int32, (M, T_PAD), 1)   # table row index
    row = jax.lax.broadcasted_iota(jnp.int32, (M, T_PAD), 0)   # token row index
    pos_id = row % SEQ                                          # position within seq
    sel = ((col == ids)
           | (col == tt + TYPE_OFF)
           | (col == pos_id + POS_OFF)).astype(jnp.float32)     # (M, T_PAD)

    # word_emb[ids] + type_emb[tt] + pos_emb[pos] via a single MXU pass
    h = jnp.dot(sel, table_ref[...],
                preferred_element_type=jnp.float32)             # (M, H)

    # -- layernorm over hidden dim (BERT embedding LayerNorm stand-in) ---------
    # gamma/beta are folded into w_ref/b_ref at init, so plain normalization here.
    mu = jnp.mean(h, axis=-1, keepdims=True)
    var = jnp.mean(jnp.square(h - mu), axis=-1, keepdims=True)
    h = (h - mu) * jax.lax.rsqrt(var + LN_EPS)

    # -- classifier head: linear1 + softmax(dim=-1), lane-dense output ---------
    # padded lanes: weight columns are zero, bias is -1e30 -> exp underflows to 0
    logits = jnp.dot(h, w_ref[...],
                     preferred_element_type=jnp.float32) + b_ref[...]   # (M, C_PAD)

    mx = jnp.max(logits, axis=-1, keepdims=True)
    e = jnp.exp(logits - mx)
    denom = jnp.sum(e, axis=-1, keepdims=True)
    o_ref[...] = (e / denom).astype(o_ref.dtype)


def fused_forward_call(packed, table, w_eff, b_eff):
    """One pallas_call, one grid step, everything resident in VMEM."""
    return pl.pallas_call(
        fused_kernel,
        out_shape=jax.ShapeDtypeStruct((M, C_PAD), jnp.float32),
        grid_spec=pl.GridSpec(
            grid=(1,),
            in_specs=[
                pl.BlockSpec((M, 2), lambda i: (0, 0)),                  # ids+types
                pl.BlockSpec((T_PAD, HIDDEN_SIZE), lambda i: (0, 0)),    # stacked emb
                pl.BlockSpec((HIDDEN_SIZE, C_PAD), lambda i: (0, 0)),    # weight
                pl.BlockSpec((1, C_PAD), lambda i: (0, 0)),              # bias
            ],
            out_specs=pl.BlockSpec((M, C_PAD), lambda i: (0, 0)),
        ),
        compiler_params=pltpu.CompilerParams(
            dimension_semantics=("arbitrary",)),   # single step; toy sizes
    )(packed, table, w_eff, b_eff)


# ------------------------------- model wrapper ---------------------------------
def init_params(key):
    """Raw parameters + ALL one-time prep (stacking, padding, folds) done here."""
    k1, k2, k3, k4, k5 = jax.random.split(key, 5)
    word_emb = 0.02 * jax.random.normal(k1, (VOCAB_SIZE, HIDDEN_SIZE), jnp.float32)
    type_emb = 0.02 * jax.random.normal(k2, (2, HIDDEN_SIZE), jnp.float32)
    pos_emb = 0.02 * jax.random.normal(k3, (SEQ, HIDDEN_SIZE), jnp.float32)
    # nn.Linear(HIDDEN_SIZE, NUM_CLASSES + 1) weight stored pre-transposed (H, C)
    linear1_w = 0.1 * jax.random.normal(k4, (HIDDEN_SIZE, NUM_LABELS), jnp.float32)
    linear1_b = 0.1 * jax.random.normal(k5, (NUM_LABELS,), jnp.float32)
    # learnable LayerNorm affine (BERT embedding LayerNorm stand-in)
    ln_gamma = jnp.ones((HIDDEN_SIZE,), jnp.float32)
    ln_beta = jnp.zeros((HIDDEN_SIZE,), jnp.float32)

    # ---- one-time prep (never on the per-call critical path) -----------------
    # stacked embedding table: [word | type | pos | zero pad] rows
    table = jnp.zeros((T_PAD, HIDDEN_SIZE), jnp.float32)
    table = table.at[:VOCAB_SIZE].set(word_emb)
    table = table.at[TYPE_OFF:TYPE_OFF + 2].set(type_emb)
    table = table.at[POS_OFF:POS_OFF + SEQ].set(pos_emb)

    # lane-dense classifier: zero-pad weight columns, bake the -1e30 softmax
    # mask into the padded bias lanes, fold LayerNorm gamma/beta into w/b.
    w_pad = jnp.pad(linear1_w, ((0, 0), (0, C_PAD - NUM_LABELS)))        # (H, 128)
    b_pad = jnp.concatenate(
        [linear1_b, jnp.full((C_PAD - NUM_LABELS,), -1e30, jnp.float32)])  # (128,)
    w_eff = ln_gamma[:, None] * w_pad                                     # (H, 128)
    b_eff = (ln_beta @ w_pad + b_pad).reshape(1, C_PAD)                   # (1, 128)

    return {"table": table, "w_eff": w_eff, "b_eff": b_eff}


@jax.jit
def term_recognizer_forward(params, input_ids, token_type_ids, attention_mask):
    # TODO(synk): attention_mask is only consumed by the real pretrained BERT
    # encoder; the stand-in backbone ignores it.
    del attention_mask

    packed = jnp.stack(
        [input_ids.reshape(M).astype(jnp.int32),
         token_type_ids.reshape(M).astype(jnp.int32)], axis=1)            # (M, 2)

    probs_pad = fused_forward_call(
        packed, params["table"], params["w_eff"], params["b_eff"])        # (M, 128)

    return probs_pad[:, :NUM_LABELS].reshape(BATCH, SEQ, NUM_LABELS)


# ------------------------------------ main --------------------------------------
if __name__ == "__main__":
    key = jax.random.PRNGKey(0)
    pkey, ikey = jax.random.split(key)

    params = init_params(pkey)

    input_ids = jax.random.randint(ikey, (BATCH, SEQ), 0, VOCAB_SIZE, dtype=jnp.int32)
    token_type_ids = jnp.zeros((BATCH, SEQ), dtype=jnp.int32)
    attention_mask = jnp.ones((BATCH, SEQ), dtype=jnp.int32)

    out = term_recognizer_forward(params, input_ids, token_type_ids, attention_mask)
    out = jax.block_until_ready(out)

    # sanity: shape, softmax rows sum to 1, non-negative probabilities
    assert out.shape == (BATCH, SEQ, NUM_LABELS)
    assert jnp.allclose(jnp.sum(out, axis=-1), 1.0, atol=1e-5)
    assert bool(jnp.all(out >= 0.0))

    print("KERNEL_OK")
</pallas_src>

<mosaic_0001>
module attributes {stable_mosaic.version = 11 : i64} {
  func.func @fused_kernel(%arg0: i32, %arg1: memref<16x2xi32, #tpu.memory_space<vmem>>, %arg2: memref<80x32xf32, #tpu.memory_space<vmem>>, %arg3: memref<32x128xf32, #tpu.memory_space<vmem>>, %arg4: memref<1x128xf32, #tpu.memory_space<vmem>>, %arg5: memref<16x128xf32, #tpu.memory_space<vmem>>) attributes {dimension_semantics = [#tpu.dimension_semantics<arbitrary>], iteration_bounds = array<i64: 1>, scalar_prefetch = 0 : i64, scratch_operands = 0 : i64, tpu.core_type = #tpu.core_type<tc>, window_params = [{pipeline_mode = #tpu.pipeline_mode<synchronous>, transform_indices = @transform_0, window_bounds = array<i64: 16, 2>}, {pipeline_mode = #tpu.pipeline_mode<synchronous>, transform_indices = @transform_1, window_bounds = array<i64: 80, 32>}, {pipeline_mode = #tpu.pipeline_mode<synchronous>, transform_indices = @transform_2, window_bounds = array<i64: 32, 128>}, {pipeline_mode = #tpu.pipeline_mode<synchronous>, transform_indices = @transform_3, window_bounds = array<i64: 1, 128>}, {pipeline_mode = #tpu.pipeline_mode<synchronous>, transform_indices = @transform_4, window_bounds = array<i64: 16, 128>}]} {
    %c0 = arith.constant 0 : index
    %c0_0 = arith.constant 0 : index
    %0 = vector.load %arg1[%c0, %c0_0] : memref<16x2xi32, #tpu.memory_space<vmem>>, vector<16x2xi32>
    %1 = vector.extract_strided_slice %0 {offsets = [0, 0], sizes = [16, 1], strides = [1, 1]} : vector<16x2xi32> to vector<16x1xi32>
    %2 = vector.extract_strided_slice %0 {offsets = [0, 1], sizes = [16, 1], strides = [1, 1]} : vector<16x2xi32> to vector<16x1xi32>
    %3 = tpu.iota {dimensions = array<i32: 1>} : vector<16x80xi32>
    %4 = tpu.iota {dimensions = array<i32: 0>} : vector<16x80xi32>
    %c8_i32 = arith.constant 8 : i32
    %c0_i32 = arith.constant 0 : i32
    %5 = arith.cmpi eq, %c8_i32, %c0_i32 : i32
    %c1_i32 = arith.constant 1 : i32
    %6 = arith.select %5, %c1_i32, %c8_i32 : i32
    %7 = vector.broadcast %6 : i32 to vector<16x80xi32>
    %8 = arith.remsi %4, %7 : vector<16x80xi32>
    %c0_i32_1 = arith.constant 0 : i32
    %9 = vector.broadcast %c0_i32_1 : i32 to vector<16x80xi32>
    %10 = arith.cmpi ne, %8, %9 : vector<16x80xi32>
    %c0_i32_2 = arith.constant 0 : i32
    %11 = vector.broadcast %c0_i32_2 : i32 to vector<16x80xi32>
    %12 = arith.cmpi slt, %8, %11 : vector<16x80xi32>
    %c0_i32_3 = arith.constant 0 : i32
    %13 = arith.cmpi slt, %6, %c0_i32_3 : i32
    %14 = vector.broadcast %13 : i1 to vector<16x80xi1>
    %15 = vector.broadcast %14 : vector<16x80xi1> to vector<16x80xi1>
    %16 = arith.xori %12, %15 : vector<16x80xi1>
    %17 = arith.andi %16, %10 : vector<16x80xi1>
    %18 = vector.broadcast %6 : i32 to vector<16x80xi32>
    %19 = arith.addi %8, %18 : vector<16x80xi32>
    %20 = arith.select %17, %19, %8 : vector<16x80xi1>, vector<16x80xi32>
    %21 = vector.broadcast %1 : vector<16x1xi32> to vector<16x80xi32>
    %22 = arith.cmpi eq, %3, %21 : vector<16x80xi32>
    %c64_i32 = arith.constant 64 : i32
    %23 = vector.broadcast %c64_i32 : i32 to vector<16x1xi32>
    %24 = arith.addi %2, %23 : vector<16x1xi32>
    %25 = vector.broadcast %24 : vector<16x1xi32> to vector<16x80xi32>
    %26 = arith.cmpi eq, %3, %25 : vector<16x80xi32>
    %27 = arith.ori %22, %26 : vector<16x80xi1>
    %c66_i32 = arith.constant 66 : i32
    %28 = vector.broadcast %c66_i32 : i32 to vector<16x80xi32>
    %29 = arith.addi %20, %28 : vector<16x80xi32>
    %30 = arith.cmpi eq, %3, %29 : vector<16x80xi32>
    %31 = arith.ori %27, %30 : vector<16x80xi1>
    %32 = arith.extui %31 : vector<16x80xi1> to vector<16x80xi32>
    %33 = arith.sitofp %32 : vector<16x80xi32> to vector<16x80xf32>
    %c0_4 = arith.constant 0 : index
    %c0_5 = arith.constant 0 : index
    %34 = vector.load %arg2[%c0_4, %c0_5] : memref<80x32xf32, #tpu.memory_space<vmem>>, vector<80x32xf32>
    %cst = arith.constant dense<0.000000e+00> : vector<16x32xf32>
    %35 = tpu.matmul %33, %34, %cst {dimension_numbers = #tpu.dot_dimension_numbers<[1], [0], [0], [1], [0, 0, 1, 1], [], []>} : vector<16x80xf32>, vector<80x32xf32>, vector<16x32xf32> -> vector<16x32xf32>
    %cst_6 = arith.constant dense<0.000000e+00> : vector<16xf32>
    %36 = vector.multi_reduction <add>, %35, %cst_6 [1] : vector<16x32xf32> to vector<16xf32>
    %37 = vector.shape_cast %36 : vector<16xf32> to vector<16x1xf32>
    %cst_7 = arith.constant 3.200000e+01 : f32
    %38 = vector.broadcast %cst_7 : f32 to vector<16x1xf32>
    %39 = arith.divf %37, %38 : vector<16x1xf32>
    %40 = vector.broadcast %39 : vector<16x1xf32> to vector<16x32xf32>
    %41 = arith.subf %35, %40 : vector<16x32xf32>
    %42 = arith.mulf %41, %41 : vector<16x32xf32>
    %cst_8 = arith.constant dense<0.000000e+00> : vector<16xf32>
    %43 = vector.multi_reduction <add>, %42, %cst_8 [1] : vector<16x32xf32> to vector<16xf32>
    %44 = vector.shape_cast %43 : vector<16xf32> to vector<16x1xf32>
    %cst_9 = arith.constant 3.200000e+01 : f32
    %45 = vector.broadcast %cst_9 : f32 to vector<16x1xf32>
    %46 = arith.divf %44, %45 : vector<16x1xf32>
    %47 = vector.broadcast %39 : vector<16x1xf32> to vector<16x32xf32>
    %48 = arith.subf %35, %47 : vector<16x32xf32>
    %cst_10 = arith.constant 9.99999996E-13 : f32
    %49 = vector.broadcast %cst_10 : f32 to vector<16x1xf32>
    %50 = arith.addf %46, %49 : vector<16x1xf32>
    %51 = math.rsqrt %50 : vector<16x1xf32>
    %52 = vector.broadcast %51 : vector<16x1xf32> to vector<16x32xf32>
    %53 = arith.mulf %48, %52 : vector<16x32xf32>
    %c0_11 = arith.constant 0 : index
    %c0_12 = arith.constant 0 : index
    %54 = vector.load %arg3[%c0_11, %c0_12] : memref<32x128xf32, #tpu.memory_space<vmem>>, vector<32x128xf32>
    %cst_13 = arith.constant dense<0.000000e+00> : vector<16x128xf32>
    %55 = tpu.matmul %53, %54, %cst_13 {dimension_numbers = #tpu.dot_dimension_numbers<[1], [0], [0], [1], [0, 0, 1, 1], [], []>} : vector<16x32xf32>, vector<32x128xf32>, vector<16x128xf32> -> vector<16x128xf32>
    %c0_14 = arith.constant 0 : index
    %c0_15 = arith.constant 0 : index
    %56 = vector.load %arg4[%c0_14, %c0_15] : memref<1x128xf32, #tpu.memory_space<vmem>>, vector<1x128xf32>
    %57 = vector.broadcast %56 : vector<1x128xf32> to vector<16x128xf32>
    %58 = arith.addf %55, %57 : vector<16x128xf32>
    %cst_16 = arith.constant dense<0xFF800000> : vector<16xf32>
    %59 = vector.multi_reduction <maximumf>, %58, %cst_16 [1] : vector<16x128xf32> to vector<16xf32>
    %60 = vector.shape_cast %59 : vector<16xf32> to vector<16x1xf32>
    %61 = vector.broadcast %60 : vector<16x1xf32> to vector<16x128xf32>
    %62 = arith.subf %58, %61 : vector<16x128xf32>
    %63 = math.exp %62 : vector<16x128xf32>
    %cst_17 = arith.constant dense<0.000000e+00> : vector<16xf32>
    %64 = vector.multi_reduction <add>, %63, %cst_17 [1] : vector<16x128xf32> to vector<16xf32>
    %65 = vector.shape_cast %64 : vector<16xf32> to vector<16x1xf32>
    %66 = vector.broadcast %65 : vector<16x1xf32> to vector<16x128xf32>
    %67 = arith.divf %63, %66 : vector<16x128xf32>
    %c0_18 = arith.constant 0 : index
    %c0_19 = arith.constant 0 : index
    %68 = vector.load %arg5[%c0_18, %c0_19] : memref<16x128xf32, #tpu.memory_space<vmem>>, vector<16x128xf32>
    tpu.vector_store %arg5[%c0_18, %c0_19], %67 {strides = array<i32>} : memref<16x128xf32, #tpu.memory_space<vmem>>, vector<16x128xf32>,
    return
  }
  func.func @transform_0(%arg0: i32) -> (i32, i32) {
    %c0_i32 = arith.constant 0 : i32
    %c0_i32_0 = arith.constant 0 : i32
    %c0_i32_1 = arith.constant 0 : i32
    return %c0_i32, %c0_i32_0 : i32, i32
  }
  func.func @transform_1(%arg0: i32) -> (i32, i32) {
    %c0_i32 = arith.constant 0 : i32
    %c0_i32_0 = arith.constant 0 : i32
    %c0_i32_1 = arith.constant 0 : i32
    return %c0_i32, %c0_i32_0 : i32, i32
  }
  func.func @transform_2(%arg0: i32) -> (i32, i32) {
    %c0_i32 = arith.constant 0 : i32
    %c0_i32_0 = arith.constant 0 : i32
    %c0_i32_1 = arith.constant 0 : i32
    return %c0_i32, %c0_i32_0 : i32, i32
  }
  func.func @transform_3(%arg0: i32) -> (i32, i32) {
    %c0_i32 = arith.constant 0 : i32
    %c0_i32_0 = arith.constant 0 : i32
    %c0_i32_1 = arith.constant 0 : i32
    return %c0_i32, %c0_i32_0 : i32, i32
  }
  func.func @transform_4(%arg0: i32) -> (i32, i32) {
    %c0_i32 = arith.constant 0 : i32
    %c0_i32_0 = arith.constant 0 : i32
    %c0_i32_1 = arith.constant 0 : i32
    return %c0_i32, %c0_i32_0 : i32, i32
  }
}

</mosaic_0001>

<bundles_post_ra>
// kernel: term_recognizer_forward.1
= control target key start
LH: loop header
LB: loop body
LE: loop exit
PB: predicated region body
PF: predicated region fallthrough
CT: control target
= control target key end

     0   :  { %v392_v0 = vmov 0   ;;  %v393_v7 = vmov 1   ;;  %v19_v16 = vlaneseq  ;;  %vm88_vm9 = vcmask 654336   ;;  %s483_s0 = inlined_call_operand.vmem [shape: s32[16,2], index: 0, kind: input, shape index: {}]   ;;  %s484_s1 = inlined_call_operand.vmem [shape: f32[80,32], index: 1, kind: input, shape index: {}]   ;;  %s485_s2 = inlined_call_operand.vmem [shape: f32[32,128], index: 2, kind: input, shape index: {}]   ;;  %s486_s3 = inlined_call_operand.vmem [shape: f32[1,128], index: 3, kind: input, shape index: {}]   ;;  %s487_s4 = inlined_call_operand.vmem [shape: f32[16,128], index: 4, kind: output, shape index: {}]  }
   0x1   :  { %378 = vset.pattern.permute.xlu1 %v392_v0  ;;  %376 = vset.pattern.permute.xlu0 %v392_v0  ;;  %v18_v1 = vld [vmem:[%s483_s0 + $0x8] sm:$0xff]  ;;  %v17_v2 = vld [vmem:[%s483_s0] sm:$0xff]  ;;  %v85_v8 = vld [vmem:[%s484_s1 + $0x38] sm:$0xff]  ;;  %v394_v28 = vmov 0.0   ;;  %vm170_vm11 = vcmask 261120  }
   0x2   :  { %v87_v3 = vld [vmem:[%s484_s1 + $0x48] sm:$0xff]  ;;  %52 = vperm.xlu1 %378, %v18_v1   ;;  %49 = vperm.xlu0 %376, %v17_v2   ;;  %v86_v4 = vld [vmem:[%s484_s1 + $0x40] sm:$0xff]  ;;  %v57_v5 = vadd.s32 64, %v18_v1  ;;  %v56_v6 = vadd.s32 64, %v17_v2  ;;  %v84_v9 = vld [vmem:[%s484_s1 + $0x30] sm:$0xff]  ;;  %v22_v17 = vshrl.u32 %v19_v16, 7 }
   0x3   :  { %339 = vmatprep.subr.mxu0 %v87_v3  ;;  %v83_v10 = vld [vmem:[%s484_s1 + $0x28] sm:$0xff]  ;;  %v82_v11 = vld [vmem:[%s484_s1 + $0x20] sm:$0xff]  ;;  %v81_v12 = vld [vmem:[%s484_s1 + $0x18] sm:$0xff]  ;;  %v20_v24 = vand.u32 127, %v19_v16 }
   0x4   :  { %340 = vmatpush3.msra.mxu0 %v87_v3  ;;  %v80_v13 = vld [vmem:[%s484_s1 + $0x10] sm:$0xff]  ;;  %v79_v14 = vld [vmem:[%s484_s1 + $0x8] sm:$0xff]  ;;  %v78_v15 = vld [vmem:[%s484_s1] sm:$0xff]  ;;  %v23_v18 = vadd.s32 8, %v22_v17  ;;  %v28_v20 = vand.u32 7, %v22_v17 }
   0x5   :  { %341 = vmatprep.subr.mxu0 %v86_v4  ;;  %v201_v45 = vld [vmem:[%s485_s2 + $0x18] sm:$0xff]  ;;  %v200_v46 = vld [vmem:[%s485_s2 + $0x10] sm:$0xff]  ;;  %v199_v47 = vld [vmem:[%s485_s2 + $0x8] sm:$0xff] }
   0x6   :  { %379 = vset.pattern.permute.xlu1 %v393_v7  ;;  %377 = vset.pattern.permute.xlu0 %v393_v7  ;;  %v35_v19 = vand.u32 7, %v23_v18  ;;  %v68_v25 = vadd.s32 66, %v28_v20  ;;  %v198_v48 = vld [vmem:[%s485_s2] sm:$0xff] }
   0x7   :  { %62 = vperm.xlu1 %379, %v57_v5   ;;  %59 = vperm.xlu0 %377, %v56_v6   ;;  %v318_v59 = vld [vmem:[%s486_s3] ss:$0 sm:$0xff] }
   0x8   :  { %342 = vmatpush3.msra.mxu0 %v86_v4  ;;  %v69_v23 = vadd.s32 66, %v35_v19  ;;  %vm70_vm5 = vcmp.eq.s32.totalorder %v20_v24, %v68_v25  ;;  %362 = vmatprep.subr.mxu1 %v201_v45 }
   0x9   :  { %343 = vmatprep.subr.mxu0 %v85_v8  ;;  %363 = vmatpush3.msra.mxu1 %v201_v45 }
   0xa   :  { %344 = vmatpush3.msra.mxu0 %v85_v8  ;;  %vm71_vm0 = vcmp.eq.s32.totalorder %v20_v24, %v69_v23  ;;  %364 = vmatprep.subr.mxu1 %v200_v46 }
   0xb   :  { %345 = vmatprep.subr.mxu0 %v84_v9  ;;  %365 = vmatpush3.msra.mxu1 %v200_v46 }
   0xc   :  { %346 = vmatpush3.msra.mxu0 %v84_v9  ;;  %366 = vmatprep.subr.mxu1 %v199_v47 }
   0xd   :  { %347 = vmatprep.subr.mxu0 %v83_v10  ;;  %367 = vmatpush3.msra.mxu1 %v199_v47 }
   0xe   :  { %348 = vmatpush3.msra.mxu0 %v83_v10  ;;  %368 = vmatprep.subr.mxu1 %v198_v48 }
   0xf   :  { %349 = vmatprep.subr.mxu0 %v82_v11  ;;  %369 = vmatpush3.msra.mxu1 %v198_v48 }
  0x10   :  { %350 = vmatpush3.msra.mxu0 %v82_v11 }
  0x11   :  { %351 = vmatprep.subr.mxu0 %v81_v12 }
  0x12   :  { %352 = vmatpush3.msra.mxu0 %v81_v12 }
  0x13   :  { %353 = vmatprep.subr.mxu0 %v80_v13 }
  0x14   :  { %354 = vmatpush3.msra.mxu0 %v80_v13 }
  0x15   :  { %355 = vmatprep.subr.mxu0 %v79_v14 }
  0x16   :  { %356 = vmatpush3.msra.mxu0 %v79_v14 }
  0x17   :  { %357 = vmatprep.subr.mxu0 %v78_v15 }
  0x18   :  { %358 = vmatpush3.msra.mxu0 %v78_v15 }
  0x7d   :  { %v50_v21 = vpop.permute.xlu0 %49  ;;  %v53_v22 = vpop.permute.xlu1 %52 }
  0x7e   :  { %vm55_vm1 = vcmp.eq.s32.totalorder %v20_v24, %v53_v22  ;;  %vm54_vm6 = vcmp.eq.s32.totalorder %v20_v24, %v50_v21 }
  0x82   :  { %v63_v26 = vpop.permute.xlu1 %62  ;;  %v60_v27 = vpop.permute.xlu0 %59 }
  0x83   :  { %vm65_vm2 = vcmp.eq.s32.totalorder %v20_v24, %v63_v26  ;;  %vm64_vm3 = vcmp.eq.s32.totalorder %v20_v24, %v60_v27 }
  0x84   :  { %vm67_vm4 = vmor %vm55_vm1, %vm65_vm2 }
  0x85   :  { %vm73_vm7 = vmor %vm67_vm4, %vm71_vm0 }
  0x86   :  { %vm66_vm8 = vmor %vm54_vm6, %vm64_vm3  ;;  %v315_v29 = vsel %vm73_vm7, 1.0, %v394_v28 }
  0x87   :  { %vm72_vm10 = vmor %vm66_vm8, %vm70_vm5 }
  0x88   :  { %v314_v30 = vsel %vm72_vm10, 1.0, %v394_v28 }
  0x89   :  { %359 = vmatprep.mubr.msk.f32.mxu0 %vm88_vm9, %v314_v30 }
  0x8a   :  { %360 = vmatmul.mubr.msk.f32.vlgmr.msra.gmra.mxu0 %vm88_vm9, %v315_v29 }
 0x14a   :  { %v361_v31 = vpop.f32.mrf.mxu0 }
 0x14b   :  { %v174_v32 = vsel %vm170_vm11, %v361_v31, 0.0 }
 0x14c   :  { %175 = vadd.xlane.f32.xlu0 %v174_v32  ;;  %v161_v33 = vpop.f32.mrf.mxu0 }
 0x14d   :  { %v171_v34 = vsel %vm170_vm11, %v161_v33, 0.0 }
 0x14e   :  { %172 = vadd.xlane.f32.xlu1 %v171_v34 }
 0x1d5   :  { %v176_v35 = vpop.xlane.xlu0 %175 }
 0x1d6   :  { %v179_v36 = vmul.f32 0.03125, %v176_v35 }
 0x1d7   :  { %v173_v37 = vpop.xlane.xlu1 %172 }
 0x1d8   :  { %v181_v38 = vsub.f32 %v361_v31, %v179_v36  ;;  %v178_v39 = vmul.f32 0.03125, %v173_v37 }
 0x1da   :  { %v180_v40 = vsub.f32 %v161_v33, %v178_v39  ;;  %v183_v41 = vmul.f32 %v181_v38, %v181_v38 }
 0x1dc   :  { %v187_v42 = vsel %vm170_vm11, %v183_v41, 0.0  ;;  %v182_v43 = vmul.f32 %v180_v40, %v180_v40 }
 0x1dd   :  { %188 = vadd.xlane.f32.xlu1 %v187_v42 }
 0x1de   :  { %v184_v44 = vsel %vm170_vm11, %v182_v43, 0.0 }
 0x1df   :  { %185 = vadd.xlane.f32.xlu0 %v184_v44 }
 0x266   :  { %v189_v49 = vpop.xlane.xlu1 %188 }
 0x267   :  { %v191_v50 = vmul.f32 0.03125, %v189_v49 }
 0x268   :  { %v186_v51 = vpop.xlane.xlu0 %185 }
 0x269   :  { %v193_v52 = vadd.f32 1e-12, %v191_v50  ;;  %v190_v53 = vmul.f32 0.03125, %v186_v51 }
 0x26b   :  { %v192_v54 = vadd.f32 1e-12, %v190_v53  ;;  %380 = vrsqrt.f32 %v193_v52 }
 0x26d   :  { %382 = vrsqrt.f32 %v192_v54 }
 0x278   :  { %v381_v55 = vpop.eup %380 }
 0x279   :  { %v197_v58 = vmul.f32 %v381_v55, %v181_v38 }
 0x27a   :  { %v383_v56 = vpop.eup %382 }
 0x27b   :  { %v196_v57 = vmul.f32 %v383_v56, %v180_v40 }
 0x27d   :  { %370 = vmatprep.mubr.msk.f32.mxu1 %vm170_vm11, %v196_v57 }
 0x27e   :  { %371 = vmatmul.mubr.msk.f32.vlgmr.msra.gmra.mxu1 %vm170_vm11, %v197_v58 }
 0x33e   :  { %v372_v60 = vpop.f32.mrf.mxu1 }
 0x33f   :  { %v287_v61 = vadd.f32 %v372_v60, %v318_v59 }
 0x340   :  { %v281_v62 = vpop.f32.mrf.mxu1 }
 0x341   :  { %v282_v63 = vadd.f32 %v318_v59, %v281_v62  ;;  %292 = vmax.xlane.f32.xlu1 %v287_v61 }
 0x343   :  { %290 = vmax.xlane.f32.xlu0 %v282_v63 }
 0x3ca   :  { %v293_v0 = vpop.xlane.xlu1 %292 }
 0x3cb   :  { %v295_v1 = vsub.f32 %v287_v61, %v293_v0 }
 0x3cc   :  { %v291_v2 = vpop.xlane.xlu0 %290 }
 0x3cd   :  { %v298_v3 = vmul.f32 1.442695, %v295_v1  ;;  %v294_v4 = vsub.f32 %v282_v63, %v291_v2 }
 0x3cf   :  { %384 = vpow2.f32 %v298_v3  ;;  %v296_v5 = vmul.f32 1.442695, %v294_v4 }
 0x3d1   :  { %386 = vpow2.f32 %v296_v5 }
 0x3dc   :  { %v385_v6 = vpop.eup %384 }
 0x3dd   :  { %302 = vadd.xlane.f32.xlu1 %v385_v6 }
 0x3de   :  { %v387_v7 = vpop.eup %386 }
 0x3df   :  { %300 = vadd.xlane.f32.xlu0 %v387_v7 }
 0x466   :  { %v303_v8 = vpop.xlane.xlu1 %302 }
 0x467   :  { %388 = vrcp.f32 %v303_v8 }
 0x468   :  { %v301_v9 = vpop.xlane.xlu0 %300 }
 0x469   :  { %390 = vrcp.f32 %v301_v9 }
 0x474   :  { %v389_v10 = vpop.eup %388 }
 0x475   :  { %v307_v11 = vmul.f32 %v389_v10, %v385_v6 }
 0x476   :  { %v391_v12 = vpop.eup %390 }
 0x477   :  { %309 = vst [vmem:[%s487_s4 + $0x8] sm:$0xff] %v307_v11  ;;  %v305_v13 = vmul.f32 %v391_v12, %v387_v7 }
 0x479   :  { %308 = vst [vmem:[%s487_s4] sm:$0xff] %v305_v13 }

</bundles_post_ra>
